<compile_context>
chip_gen: v5e
topology: v5e:2x2
jax: 0.10.0
libtpu: 0.0.40
codegen_flags: <defaults>
</compile_context>

<pallas_src>
import functools

import jax
import jax.numpy as jnp
from jax.experimental import pallas as pl
from jax.experimental.pallas import tpu as pltpu


def _round_up(x, m):
    return (x + m - 1) // m * m


def _mlp_kernel(*refs, num_layers):
    """Fused MLP tile: out = lin_L(... relu(lin_1(relu(lin_0(x)))) ...).

    refs = (x_ref, w0_ref, b0_ref, ..., w{L-1}_ref, b{L-1}_ref, o_ref)
    Matmuls hit the MXU with f32 accumulation; bias-add / relu on the VPU.
    Intermediate activations stay resident in VMEM/vregs.
    """
    x_ref = refs[0]
    o_ref = refs[-1]
    wb = refs[1:-1]

    act = x_ref[...]
    for l in range(num_layers):
        w = wb[2 * l][...]
        b = wb[2 * l + 1][...]                       # (1, N) — broadcasts over rows
        acc = jnp.dot(act, w, preferred_element_type=jnp.float32) + b.astype(jnp.float32)
        act = jnp.maximum(acc, 0.0) if l < num_layers - 1 else acc
    o_ref[...] = act.astype(o_ref.dtype)


def vae_reconstruction_forward(x, parameters, *, max_tile_rows=1024):
    """Mirror of VAE_reconstruction_optimized.forward.

    parameters = [w0, b0, w1, b1, ..., wL, bL]
    Hidden layers use relu; the final layer is linear (logits).
    """
    assert len(parameters) >= 2 and len(parameters) % 2 == 0
    num_layers = len(parameters) // 2

    M, K0 = x.shape
    dims = [K0] + [parameters[2 * l].shape[1] for l in range(num_layers)]
    N_out = dims[-1]
    dtype = x.dtype

    # ---- batch tiling -----------------------------------------------------
    M_8 = _round_up(M, 8)
    num_tiles = max(1, pl.cdiv(M_8, max_tile_rows))
    if num_tiles == 1 and M_8 >= 16:
        num_tiles = 2  # feed both TensorCores on v7x; ~free on 1-TC chips
    tm = _round_up(pl.cdiv(M_8, num_tiles), 8)
    M_pad = tm * num_tiles

    # Only batch rows are ever padded (rows are independent; sliced off below).
    x_in = x if M_pad == M else jnp.pad(x, ((0, M_pad - M), (0, 0)))

    # Biases go in as (1, N) rows so they broadcast inside the kernel.
    flat_params = []
    for l in range(num_layers):
        flat_params.append(parameters[2 * l])
        flat_params.append(parameters[2 * l + 1].reshape(1, -1))

    # ---- BlockSpecs: real shapes, full-dim feature blocks ------------------
    in_specs = [pl.BlockSpec((tm, dims[0]), lambda i: (i, 0))]
    for l in range(num_layers):
        kd, nd = dims[l], dims[l + 1]
        in_specs.append(pl.BlockSpec((kd, nd), lambda i: (0, 0)))
        in_specs.append(pl.BlockSpec((1, nd), lambda i: (0, 0)))
    out_spec = pl.BlockSpec((tm, N_out), lambda i: (i, 0))

    # ---- cost estimate / VMEM budget (real, unpadded traffic) --------------
    itemsize = jnp.dtype(dtype).itemsize
    param_bytes = sum(
        (dims[l] * dims[l + 1] + dims[l + 1]) for l in range(num_layers)
    ) * itemsize
    flops = 2 * M_pad * sum(dims[l] * dims[l + 1] for l in range(num_layers))
    bytes_accessed = itemsize * M_pad * (dims[0] + N_out) + param_bytes

    # Double-buffered activation/output tiles + (conservatively) double-buffered
    # weights/biases, with headroom.  Capped at v7x's 64 MiB physical VMEM.
    footprint = 2 * tm * (dims[0] + N_out) * itemsize + 2 * param_bytes
    vmem_limit = int(min(64 << 20, max(int(footprint * 1.5), 16 << 20)))

    kernel = functools.partial(_mlp_kernel, num_layers=num_layers)

    out = pl.pallas_call(
        kernel,
        out_shape=jax.ShapeDtypeStruct((M_pad, N_out), dtype),
        grid=(num_tiles,),
        in_specs=in_specs,
        out_specs=out_spec,
        compiler_params=pltpu.CompilerParams(
            dimension_semantics=("parallel",),
            vmem_limit_bytes=vmem_limit,
        ),
        cost_estimate=pl.CostEstimate(
            flops=int(flops), transcendentals=0, bytes_accessed=int(bytes_accessed)
        ),
    )(x_in, *flat_params)

    return out if M_pad == M else out[:M]


def _make_parameters(key, layer_sizes, dtype=jnp.float32):
    """Deterministic synthetic (w, b) list matching the PyTorch param layout."""
    params = []
    for d_in, d_out in zip(layer_sizes[:-1], layer_sizes[1:]):
        key, kw, kb = jax.random.split(key, 3)
        scale = 1.0 / jnp.sqrt(jnp.asarray(d_in, dtype))
        w = jax.random.normal(kw, (d_in, d_out), dtype) * scale
        b = jax.random.normal(kb, (d_out,), dtype) * 0.1
        params += [w, b]
    return params


def _ref_forward(x, parameters):
    """Pure-JAX reference (full-precision matmuls)."""
    act = x
    for i in range(0, len(parameters) - 2, 2):
        act = jnp.maximum(
            jnp.dot(act, parameters[i], precision=jax.lax.Precision.HIGHEST)
            + parameters[i + 1],
            0.0,
        )
    return (
        jnp.dot(act, parameters[-2], precision=jax.lax.Precision.HIGHEST)
        + parameters[-1]
    )


if __name__ == "__main__":
    key = jax.random.PRNGKey(0)
    layer_sizes = (32, 64, 64, 16)  # in -> hidden -> hidden -> logits

    key, kp = jax.random.split(key)
    params = _make_parameters(kp, layer_sizes)

    # Small batch: single tile (tm = 8), no padding anywhere.
    key, kx = jax.random.split(key)
    x_small = jax.random.normal(kx, (8, layer_sizes[0]), jnp.float32)
    pred_small = jax.block_until_ready(vae_reconstruction_forward(x_small, params))
    ref_small = _ref_forward(x_small, params)
    assert pred_small.shape == (8, layer_sizes[-1])
    assert jnp.allclose(pred_small, ref_small, atol=1e-4, rtol=1e-4)

    # Mid batch: exercises the 2-tile "parallel" grid + batch-row padding path.
    key, kx2 = jax.random.split(key)
    x_mid = jax.random.normal(kx2, (200, layer_sizes[0]), jnp.float32)
    pred_mid = jax.block_until_ready(vae_reconstruction_forward(x_mid, params))
    ref_mid = _ref_forward(x_mid, params)
    assert pred_mid.shape == (200, layer_sizes[-1])
    assert jnp.allclose(pred_mid, ref_mid, atol=1e-4, rtol=1e-4)

    # Large batch: exercises the 1024-row tile path (2 tiles of 1024 rows).
    key, kx3 = jax.random.split(key)
    x_big = jax.random.normal(kx3, (2048, layer_sizes[0]), jnp.float32)
    pred_big = jax.block_until_ready(vae_reconstruction_forward(x_big, params))
    ref_big = _ref_forward(x_big, params)
    assert pred_big.shape == (2048, layer_sizes[-1])
    assert jnp.allclose(pred_big, ref_big, atol=1e-4, rtol=1e-4)

    # TODO(synk): the module's `cost` (cross_entropy, reduce=False) is a loss
    # helper, not part of forward(); left out of the kernel.
    print("KERNEL_OK")
</pallas_src>

<mosaic_0001>
module attributes {stable_mosaic.version = 11 : i64} {
  func.func @_mlp_kernel(%arg0: i32, %arg1: memref<8x32xf32, #tpu.memory_space<vmem>>, %arg2: memref<32x64xf32, #tpu.memory_space<vmem>>, %arg3: memref<1x64xf32, #tpu.memory_space<vmem>>, %arg4: memref<64x64xf32, #tpu.memory_space<vmem>>, %arg5: memref<1x64xf32, #tpu.memory_space<vmem>>, %arg6: memref<64x16xf32, #tpu.memory_space<vmem>>, %arg7: memref<1x16xf32, #tpu.memory_space<vmem>>, %arg8: memref<8x16xf32, #tpu.memory_space<vmem>>) attributes {dimension_semantics = [#tpu.dimension_semantics<parallel>], iteration_bounds = array<i64: 1>, scalar_prefetch = 0 : i64, scratch_operands = 0 : i64, tpu.core_type = #tpu.core_type<tc>, window_params = [{transform_indices = @transform_0, window_bounds = array<i64: 8, 32>}, {pipeline_mode = #tpu.pipeline_mode<synchronous>, transform_indices = @transform_1, window_bounds = array<i64: 32, 64>}, {pipeline_mode = #tpu.pipeline_mode<synchronous>, transform_indices = @transform_2, window_bounds = array<i64: 1, 64>}, {pipeline_mode = #tpu.pipeline_mode<synchronous>, transform_indices = @transform_3, window_bounds = array<i64: 64, 64>}, {pipeline_mode = #tpu.pipeline_mode<synchronous>, transform_indices = @transform_4, window_bounds = array<i64: 1, 64>}, {pipeline_mode = #tpu.pipeline_mode<synchronous>, transform_indices = @transform_5, window_bounds = array<i64: 64, 16>}, {pipeline_mode = #tpu.pipeline_mode<synchronous>, transform_indices = @transform_6, window_bounds = array<i64: 1, 16>}, {transform_indices = @transform_7, window_bounds = array<i64: 8, 16>}]} {
    %c0 = arith.constant 0 : index
    %c0_0 = arith.constant 0 : index
    %0 = vector.load %arg1[%c0, %c0_0] : memref<8x32xf32, #tpu.memory_space<vmem>>, vector<8x32xf32>
    %c0_1 = arith.constant 0 : index
    %c0_2 = arith.constant 0 : index
    %1 = vector.load %arg2[%c0_1, %c0_2] : memref<32x64xf32, #tpu.memory_space<vmem>>, vector<32x64xf32>
    %c0_3 = arith.constant 0 : index
    %c0_4 = arith.constant 0 : index
    %2 = vector.load %arg3[%c0_3, %c0_4] : memref<1x64xf32, #tpu.memory_space<vmem>>, vector<1x64xf32>
    %cst = arith.constant dense<0.000000e+00> : vector<8x64xf32>
    %3 = tpu.matmul %0, %1, %cst {dimension_numbers = #tpu.dot_dimension_numbers<[1], [0], [0], [1], [0, 0, 1, 1], [], []>} : vector<8x32xf32>, vector<32x64xf32>, vector<8x64xf32> -> vector<8x64xf32>
    %4 = vector.broadcast %2 : vector<1x64xf32> to vector<8x64xf32>
    %5 = arith.addf %3, %4 : vector<8x64xf32>
    %cst_5 = arith.constant 0.000000e+00 : f32
    %6 = vector.broadcast %cst_5 : f32 to vector<8x64xf32>
    %7 = arith.maximumf %5, %6 : vector<8x64xf32>
    %c0_6 = arith.constant 0 : index
    %c0_7 = arith.constant 0 : index
    %8 = vector.load %arg4[%c0_6, %c0_7] : memref<64x64xf32, #tpu.memory_space<vmem>>, vector<64x64xf32>
    %c0_8 = arith.constant 0 : index
    %c0_9 = arith.constant 0 : index
    %9 = vector.load %arg5[%c0_8, %c0_9] : memref<1x64xf32, #tpu.memory_space<vmem>>, vector<1x64xf32>
    %cst_10 = arith.constant dense<0.000000e+00> : vector<8x64xf32>
    %10 = tpu.matmul %7, %8, %cst_10 {dimension_numbers = #tpu.dot_dimension_numbers<[1], [0], [0], [1], [0, 0, 1, 1], [], []>} : vector<8x64xf32>, vector<64x64xf32>, vector<8x64xf32> -> vector<8x64xf32>
    %11 = vector.broadcast %9 : vector<1x64xf32> to vector<8x64xf32>
    %12 = arith.addf %10, %11 : vector<8x64xf32>
    %cst_11 = arith.constant 0.000000e+00 : f32
    %13 = vector.broadcast %cst_11 : f32 to vector<8x64xf32>
    %14 = arith.maximumf %12, %13 : vector<8x64xf32>
    %c0_12 = arith.constant 0 : index
    %c0_13 = arith.constant 0 : index
    %15 = vector.load %arg6[%c0_12, %c0_13] : memref<64x16xf32, #tpu.memory_space<vmem>>, vector<64x16xf32>
    %c0_14 = arith.constant 0 : index
    %c0_15 = arith.constant 0 : index
    %16 = vector.load %arg7[%c0_14, %c0_15] : memref<1x16xf32, #tpu.memory_space<vmem>>, vector<1x16xf32>
    %cst_16 = arith.constant dense<0.000000e+00> : vector<8x16xf32>
    %17 = tpu.matmul %14, %15, %cst_16 {dimension_numbers = #tpu.dot_dimension_numbers<[1], [0], [0], [1], [0, 0, 1, 1], [], []>} : vector<8x64xf32>, vector<64x16xf32>, vector<8x16xf32> -> vector<8x16xf32>
    %18 = vector.broadcast %16 : vector<1x16xf32> to vector<8x16xf32>
    %19 = arith.addf %17, %18 : vector<8x16xf32>
    %c0_17 = arith.constant 0 : index
    %c0_18 = arith.constant 0 : index
    %20 = vector.load %arg8[%c0_17, %c0_18] : memref<8x16xf32, #tpu.memory_space<vmem>>, vector<8x16xf32>
    tpu.vector_store %arg8[%c0_17, %c0_18], %19 {strides = array<i32>} : memref<8x16xf32, #tpu.memory_space<vmem>>, vector<8x16xf32>,
    return
  }
  func.func @transform_0(%arg0: i32) -> (i32, i32) {
    %c0_i32 = arith.constant 0 : i32
    %c0_i32_0 = arith.constant 0 : i32
    return %arg0, %c0_i32 : i32, i32
  }
  func.func @transform_1(%arg0: i32) -> (i32, i32) {
    %c0_i32 = arith.constant 0 : i32
    %c0_i32_0 = arith.constant 0 : i32
    %c0_i32_1 = arith.constant 0 : i32
    return %c0_i32, %c0_i32_0 : i32, i32
  }
  func.func @transform_2(%arg0: i32) -> (i32, i32) {
    %c0_i32 = arith.constant 0 : i32
    %c0_i32_0 = arith.constant 0 : i32
    %c0_i32_1 = arith.constant 0 : i32
    return %c0_i32, %c0_i32_0 : i32, i32
  }
  func.func @transform_3(%arg0: i32) -> (i32, i32) {
    %c0_i32 = arith.constant 0 : i32
    %c0_i32_0 = arith.constant 0 : i32
    %c0_i32_1 = arith.constant 0 : i32
    return %c0_i32, %c0_i32_0 : i32, i32
  }
  func.func @transform_4(%arg0: i32) -> (i32, i32) {
    %c0_i32 = arith.constant 0 : i32
    %c0_i32_0 = arith.constant 0 : i32
    %c0_i32_1 = arith.constant 0 : i32
    return %c0_i32, %c0_i32_0 : i32, i32
  }
  func.func @transform_5(%arg0: i32) -> (i32, i32) {
    %c0_i32 = arith.constant 0 : i32
    %c0_i32_0 = arith.constant 0 : i32
    %c0_i32_1 = arith.constant 0 : i32
    return %c0_i32, %c0_i32_0 : i32, i32
  }
  func.func @transform_6(%arg0: i32) -> (i32, i32) {
    %c0_i32 = arith.constant 0 : i32
    %c0_i32_0 = arith.constant 0 : i32
    %c0_i32_1 = arith.constant 0 : i32
    return %c0_i32, %c0_i32_0 : i32, i32
  }
  func.func @transform_7(%arg0: i32) -> (i32, i32) {
    %c0_i32 = arith.constant 0 : i32
    %c0_i32_0 = arith.constant 0 : i32
    return %arg0, %c0_i32 : i32, i32
  }
}

</mosaic_0001>

<bundles_post_ra>
// kernel: tpu_custom_call.1
= control target key start
LH: loop header
LB: loop body
LE: loop exit
PB: predicated region body
PF: predicated region fallthrough
CT: control target
= control target key end

     0   :  { %12 = vsyncpa [#allocation3], 0  ;;  %s340_s0 = inlined_call_operand.vmem [shape: f32[8,32], index: 0, kind: input, shape index: {}]   ;;  %s341_s1 = inlined_call_operand.hbm [shape: f32[32,64], index: 1, kind: input, shape index: {}]   ;;  %s342_s2 = inlined_call_operand.vmem [shape: f32[1,64], index: 2, kind: input, shape index: {}]   ;;  %s343_s3 = inlined_call_operand.vmem [shape: f32[64,64], index: 3, kind: input, shape index: {}]   ;;  %s344_s4 = inlined_call_operand.vmem [shape: f32[1,64], index: 4, kind: input, shape index: {}]   ;;  %s345_s5 = inlined_call_operand.vmem [shape: f32[64,16], index: 5, kind: input, shape index: {}]   ;;  %s346_s6 = inlined_call_operand.vmem [shape: f32[1,16], index: 6, kind: input, shape index: {}]   ;;  %s347_s7 = inlined_call_operand.hbm [shape: f32[8,16], index: 7, kind: output, shape index: {}]  }
   0x1   :  { %13 = vsyncpa [#allocation4], 0  ;;  %s20_s26 = sshll.u32 %s341_s1, 4  ;;  %s230_s27 = smov [#allocation2]   ;;  %s21_s26 = int_to_ptr.hbm [resolvable:$true] %s20_s26 }
   0x2   :  { %s22_s28 = sshll.u32 %s230_s27, 4  ;;  %s231_s29 = smov 128   ;;  %s23_s28 = int_to_ptr.vmem [resolvable:$true] %s22_s28 }
   0x3   :  { %s232_s30 = smov 8  }
   0x4   :  { %28 = dma.hbm_to_vmem [thread:$0]  %s21_s26, 512, %s23_s28, [#allocation3], %s231_s29, %s231_s29, %s232_s30  }
   0x5   :  { %226 = dma.done.wait [#allocation3], 512  }
   0x6   :  { %227 = vsyncadd [#allocation3], 4294966784  ;;  %v47_v0 = vld [vmem:[#allocation2 + $0x18] sm:$0xff]  ;;  %v46_v1 = vld [vmem:[#allocation2 + $0x10] sm:$0xff]  ;;  %vm52_vm0 = vcmask 261120   ;;  %vm89_vm1 = vcmask 523264  }
   0x7   :  { %68 = vmatpush.msra.mxu0 %v47_v0  ;;  %v84_v2 = vld [vmem:[%s343_s3 + $0x38] sm:$0xff]  ;;  %v45_v3 = vld [vmem:[#allocation2 + $0x8] sm:$0xff]  ;;  %v83_v4 = vld [vmem:[%s343_s3 + $0x30] sm:$0xff]  ;;  %s233_s20 = smov [#allocation5]   ;;  %s158_s23 = sshll.u32 %s347_s7, 4  ;;  %vm149_vm2 = vcmask 130048   ;;  %s159_s23 = int_to_ptr.hbm [resolvable:$true] %s158_s23 }
   0x8   :  { %101 = vmatpush.msra.mxu1 %v84_v2  ;;  %v82_v5 = vld [vmem:[%s343_s3 + $0x28] sm:$0xff]  ;;  %v44_v6 = vld [vmem:[#allocation2] sm:$0xff]  ;;  %v80_v9 = vld [vmem:[%s343_s3 + $0x18] sm:$0xff] }
   0x9   :  { %69 = vmatpush.msra.mxu0 %v46_v1  ;;  %v43_v7 = vld [vmem:[%s340_s0] sm:$0xff]  ;;  %v79_v10 = vld [vmem:[%s343_s3 + $0x10] sm:$0xff]  ;;  %v78_v11 = vld [vmem:[%s343_s3 + $0x8] sm:$0xff]  ;;  %s156_s0 = sshll.u32 %s233_s20, 4  ;;  %s157_s0 = int_to_ptr.vmem [resolvable:$true] %s156_s0 }
   0xa   :  { %102 = vmatpush.msra.mxu1 %v83_v4  ;;  %v81_v8 = vld [vmem:[%s343_s3 + $0x20] sm:$0xff]  ;;  %v121_v13 = vld [vmem:[%s345_s5 + $0x38] sm:$0xff]  ;;  %v120_v14 = vld [vmem:[%s345_s5 + $0x30] sm:$0xff] }
   0xb   :  { %70 = vmatpush.msra.mxu0 %v45_v3  ;;  %v77_v12 = vld [vmem:[%s343_s3] sm:$0xff]  ;;  %137 = vmatpush.msra.mxu2 %v121_v13  ;;  %v119_v15 = vld [vmem:[%s345_s5 + $0x28] sm:$0xff]  ;;  %v117_v17 = vld [vmem:[%s345_s5 + $0x18] sm:$0xff] }
   0xc   :  { %103 = vmatpush.msra.mxu1 %v82_v5  ;;  %v118_v16 = vld [vmem:[%s345_s5 + $0x20] sm:$0xff]  ;;  %v116_v22 = vld [vmem:[%s345_s5 + $0x10] sm:$0xff]  ;;  %v115_v23 = vld [vmem:[%s345_s5 + $0x8] sm:$0xff] }
   0xd   :  { %71 = vmatpush.msra.mxu0 %v44_v6  ;;  %138 = vmatpush.msra.mxu2 %v120_v14  ;;  %v175_v18 = vld [vmem:[%s342_s2] ss:$0 sm:$0xff] }
   0xe   :  { %168 = vmatmul.msk.f32.vlgmr.msra.gmra.mxu0 %vm52_vm0, %v43_v7  ;;  %104 = vmatpush.msra.mxu1 %v81_v8  ;;  %v114_v24 = vld [vmem:[%s345_s5] sm:$0xff] }
   0xf   :  { %139 = vmatpush.msra.mxu2 %v119_v15  ;;  %v176_v25 = vld [vmem:[%s344_s4] ss:$0 sm:$0xff] }
  0x10   :  { %105 = vmatpush.msra.mxu1 %v80_v9  ;;  %v177_v29 = vld [vmem:[%s346_s6] ss:$0 sm:$0xff] }
  0x11   :  { %140 = vmatpush.msra.mxu2 %v118_v16 }
  0x12   :  { %106 = vmatpush.msra.mxu1 %v79_v10 }
  0x13   :  { %141 = vmatpush.msra.mxu2 %v117_v17 }
  0x14   :  { %107 = vmatpush.msra.mxu1 %v78_v11 }
  0x15   :  { %142 = vmatpush.msra.mxu2 %v116_v22 }
  0x16   :  { %108 = vmatpush.msra.mxu1 %v77_v12 }
  0x17   :  { %143 = vmatpush.msra.mxu2 %v115_v23 }
  0x19   :  { %144 = vmatpush.msra.mxu2 %v114_v24 }
  0x8b   :  { %v73_v19 = vpop.f32.mrf.mxu0 }
  0x8c   :  { %v74_v20 = vadd.f32 %v175_v18, %v73_v19 }
  0x8e   :  { %v76_v21 = vmax.f32 %v74_v20, 0.0 }
  0x90   :  { %169 = vmatmul.msk.f32.vlgmr.msra.gmra.mxu1 %vm89_vm1, %v76_v21 }
 0x10d   :  { %v110_v26 = vpop.f32.mrf.mxu1 }
 0x10e   :  { %v111_v27 = vadd.f32 %v176_v25, %v110_v26 }
 0x110   :  { %v113_v28 = vmax.f32 %v111_v27, 0.0 }
 0x112   :  { %170 = vmatmul.msk.f32.vlgmr.msra.gmra.mxu2 %vm89_vm1, %v113_v28 }
 0x195   :  { %v146_v30 = vpop.f32.mrf.mxu2 }
 0x196   :  { %v147_v31 = vadd.f32 %v177_v29, %v146_v30 }
 0x198   :  { %150 = vst.msk [vmem:[#allocation5] sm:$0xff] %vm149_vm2, %v147_v31 }
 0x199   :  { %161 = dma.vmem_to_hbm [thread:$0]  %s157_s0, 128, %s159_s23, [#allocation4]  }
 0x19a   :  { %228 = dma.done.wait [#allocation4], 128  }
 0x19b   :  { %229 = vsyncadd [#allocation4], 4294967168 }
 0x19c   :  { %166 = vsyncpa [#allocation3], 1 }
 0x19d   :  { %167 = vsyncpa [#allocation4], 1 }

</bundles_post_ra>
